<compile_context>
chip_gen: v6e
topology: v6e:2x2x1
jax: 0.10.0
libtpu: 0.0.40
codegen_flags: <defaults>
</compile_context>

<pallas_src>
import functools

import jax
import jax.numpy as jnp
from jax import lax
from jax.experimental import pallas as pl
from jax.experimental.pallas import tpu as pltpu


def _round_up(x, m):
    return ((x + m - 1) // m) * m


def _im2col_nkm(x, kh, kw, stride, padding, dilation, ho, wo):
    """NCHW input -> (n, cin*kh*kw, ho*wo) im2col patches.

    K ordering is (cin major; kh, kw minor) so it matches weight.reshape(cout, K)
    directly.  Built from strided slices of the padded NCHW tensor stacked on a middle
    axis, so the kh*kw-inflated tensor is written exactly once, already in its final
    layout (no extra full-tensor permute pass).
    """
    n, cin, _, _ = x.shape
    s, p, d = stride, padding, dilation
    xp = jnp.pad(x, ((0, 0), (0, 0), (p, p), (p, p))) if p else x
    cols = []
    for ikh in range(kh):
        for ikw in range(kw):
            cols.append(
                xp[:, :, ikh * d: ikh * d + s * ho: s, ikw * d: ikw * d + s * wo: s]
            )
    patches = jnp.stack(cols, axis=2)              # (n, cin, kh*kw, ho, wo)
    return patches.reshape(n, cin * kh * kw, ho * wo)


def _fused_attention_kernel(lhs_f_ref, lhs_m_ref, w_f_ref, w_m_ref,
                            convout_ref, maskupd_ref, convf_ref, activ_ref,
                            *, a, mu, s1, s2, alpha):
    """Per (batch, spatial-tile) step: two MXU matmuls + fused elementwise epilogue."""
    xf = lhs_f_ref[0]                                        # (K1, tsp)
    xm = lhs_m_ref[0]                                        # (K2, tsp)
    # (cout, K) @ (K, tsp) -> (cout, tsp): output already NCHW-ordered and lane-dense.
    cf = jnp.dot(w_f_ref[...], xf, preferred_element_type=jnp.float32)
    mf = jnp.dot(w_m_ref[...], xm, preferred_element_type=jnp.float32)

    # GaussActivation: one EUP exp per element; sigma/coefficient/bias selected by the
    # (x < mu) predicate (equivalent to the two masked branches in the PyTorch module).
    diff = mf - mu
    d2 = diff * diff
    lower = mf < mu
    sigma = jnp.where(lower, s1, s2)
    coef = jnp.where(lower, a, a - 1.0)
    bias = jnp.where(lower, 0.0, 1.0)
    activ = bias + coef * jnp.exp(-sigma * d2)

    # MaskUpdate: relu(maskFeatures) ** alpha (exp/log form; exact 0 for x <= 0).
    relu_mf = jnp.maximum(mf, 0.0)
    upd = jnp.where(relu_mf > 0.0,
                    jnp.exp(alpha * jnp.log(jnp.maximum(relu_mf, 1e-30))),
                    0.0)

    convf_ref[0] = cf.astype(convf_ref.dtype)
    activ_ref[0] = activ.astype(activ_ref.dtype)
    convout_ref[0] = (cf * activ).astype(convout_ref.dtype)
    maskupd_ref[0] = upd.astype(maskupd_ref.dtype)


def forward_attention_layer(input_features, input_masks, conv_weight, mask_conv_weight,
                            *, stride=1, padding=0, dilation=1,
                            a=1.1, mu=2.0, sigma1=1.0, sigma2=1.0, alpha=0.8):
    """Returns (convOut, maskUpdate, convFeatures, maskActiv) in NCHW like the module."""
    # GaussActivation clamps its parameters in-place every forward; params here are
    # static floats, so the clamp is applied once at trace time.
    a = float(min(max(float(a), 1.01), 6.0))
    mu = float(min(max(float(mu), 0.1), 3.0))
    s1 = float(min(max(float(sigma1), 0.5), 2.0))
    s2 = float(min(max(float(sigma2), 0.5), 2.0))
    alpha = float(alpha)

    n, cin_f, h, wd = input_features.shape
    nm, cin_m, hm, wm_ = input_masks.shape
    assert (n, h, wd) == (nm, hm, wm_), "features/masks batch & spatial dims must match"
    cout, cin_fw, kh, kw = conv_weight.shape
    cout_m, cin_mw, kh_m, kw_m = mask_conv_weight.shape
    assert cin_fw == cin_f and cin_mw == cin_m
    assert cout == cout_m and (kh, kw) == (kh_m, kw_m)
    # TODO(synk): groups > 1 and bias are not implemented; the module uses groups=1,
    # bias=False, so they are not needed here.

    s, p, d = stride, padding, dilation
    ho = (h + 2 * p - d * (kh - 1) - 1) // s + 1
    wo = (wd + 2 * p - d * (kw - 1) - 1) // s + 1
    m_sp = ho * wo                      # spatial positions per batch element
    k1 = cin_f * kh * kw
    k2 = cin_m * kh * kw
    out_dtype = input_features.dtype

    # im2col in (n, K, M) layout; weights flattened to (cout, K). No K padding.
    lhs_f = _im2col_nkm(input_features, kh, kw, s, p, d, ho, wo)   # (n, k1, m_sp)
    lhs_m = _im2col_nkm(input_masks, kh, kw, s, p, d, ho, wo)      # (n, k2, m_sp)
    w_f = conv_weight.reshape(cout, k1)
    w_m = mask_conv_weight.reshape(cout, k2)

    # Pad spatial axis to a lane multiple (unmasked lane-dense stores); the padded
    # columns produce garbage activations that are sliced off below.
    mp = _round_up(m_sp, 128)
    if mp != m_sp:
        lhs_f = jnp.pad(lhs_f, ((0, 0), (0, 0), (0, mp - m_sp)))
        lhs_m = jnp.pad(lhs_m, ((0, 0), (0, 0), (0, mp - m_sp)))

    # Spatial tile: a multiple of 128 dividing mp, preferring >=2 total grid blocks
    # (v7x's two TensorCores) and keeping the double-buffered lhs streams under budget.
    # TODO(synk): for very large cin*kh*kw (K >~ 8K f32) a K-reduction grid axis with a
    # VMEM accumulator would be needed; unnecessary at LBAM channel counts.
    itemsize = jnp.dtype(out_dtype).itemsize
    budget_cols = max(128, (8 << 20) // max((k1 + k2) * itemsize, 1))
    tsp = 128
    for cand in (512, 256):
        if mp % cand == 0 and cand <= budget_cols and n * (mp // cand) >= 2:
            tsp = cand
            break
    grid = (n, mp // tsp)

    kernel = functools.partial(_fused_attention_kernel,
                               a=a, mu=mu, s1=s1, s2=s2, alpha=alpha)
    lhs_f_spec = pl.BlockSpec((1, k1, tsp), lambda b, sblk: (b, 0, sblk))
    lhs_m_spec = pl.BlockSpec((1, k2, tsp), lambda b, sblk: (b, 0, sblk))
    w_f_spec = pl.BlockSpec((cout, k1), lambda b, sblk: (0, 0))
    w_m_spec = pl.BlockSpec((cout, k2), lambda b, sblk: (0, 0))
    out_spec = pl.BlockSpec((1, cout, tsp), lambda b, sblk: (b, 0, sblk))
    out_sds = jax.ShapeDtypeStruct((n, cout, mp), out_dtype)

    conv_out, mask_upd, conv_f, mask_activ = pl.pallas_call(
        kernel,
        out_shape=(out_sds, out_sds, out_sds, out_sds),
        grid_spec=pltpu.PrefetchScalarGridSpec(
            num_scalar_prefetch=0,
            grid=grid,
            in_specs=[lhs_f_spec, lhs_m_spec, w_f_spec, w_m_spec],
            out_specs=[out_spec, out_spec, out_spec, out_spec],
        ),
        compiler_params=pltpu.CompilerParams(
            dimension_semantics=("parallel", "parallel"),
            vmem_limit_bytes=32 * 1024 * 1024,
        ),
    )(lhs_f, lhs_m, w_f, w_m)

    def _to_nchw(y):
        if mp != m_sp:
            y = y[:, :, :m_sp]
        return y.reshape(n, cout, ho, wo)   # free view reshape (already NCHW order)

    return (_to_nchw(conv_out), _to_nchw(mask_upd),
            _to_nchw(conv_f), _to_nchw(mask_activ))


# ---------------------------------------------------------------------------
# Pure-JAX reference (XLA conv, HIGHEST precision) — correctness check only.
# ---------------------------------------------------------------------------
def _reference_forward(x, m, wc, wm, *, stride, padding, dilation=1,
                       a=1.1, mu=2.0, s1=1.0, s2=1.0, alpha=0.8):
    dn = lax.conv_dimension_numbers(x.shape, wc.shape, ("NCHW", "OIHW", "NCHW"))
    conv_f = lax.conv_general_dilated(
        x, wc, (stride, stride), [(padding, padding)] * 2,
        rhs_dilation=(dilation, dilation), dimension_numbers=dn,
        precision=lax.Precision.HIGHEST)
    dn_m = lax.conv_dimension_numbers(m.shape, wm.shape, ("NCHW", "OIHW", "NCHW"))
    mask_f = lax.conv_general_dilated(
        m, wm, (stride, stride), [(padding, padding)] * 2,
        rhs_dilation=(dilation, dilation), dimension_numbers=dn_m,
        precision=lax.Precision.HIGHEST)

    a = min(max(a, 1.01), 6.0)
    mu = min(max(mu, 0.1), 3.0)
    s1 = min(max(s1, 0.5), 2.0)
    s2 = min(max(s2, 0.5), 2.0)
    lower = mask_f < mu
    left = a * jnp.exp(-s1 * (mask_f - mu) ** 2)
    right = 1.0 + (a - 1.0) * jnp.exp(-s2 * (mask_f - mu) ** 2)
    activ = jnp.where(lower, left, right)
    conv_out = conv_f * activ
    mask_upd = jnp.power(jnp.maximum(mask_f, 0.0), alpha)
    return conv_out, mask_upd, conv_f, activ


if __name__ == "__main__":
    key = jax.random.PRNGKey(0)
    k_feat, k_mask, k_wc, k_wm = jax.random.split(key, 4)

    # ForwardAttentionLayer(inputChannels=4, outputChannels=8, kernelSize=3, stride=1, padding=1)
    n, cin, h, w = 2, 4, 16, 16
    cout, ksize, stride, padding = 8, 3, 1, 1

    input_features = jax.random.normal(k_feat, (n, cin, h, w), dtype=jnp.float32)
    # inputChannels == 4 -> maskConv takes 3-channel masks (as in the module).
    input_masks = jax.random.uniform(k_mask, (n, 3, h, w), dtype=jnp.float32)

    # weights_init('gaussian'): N(0, 0.02), bias=False.
    conv_w = 0.02 * jax.random.normal(k_wc, (cout, cin, ksize, ksize), dtype=jnp.float32)
    mask_w = 0.02 * jax.random.normal(k_wm, (cout, 3, ksize, ksize), dtype=jnp.float32)

    fwd = jax.jit(functools.partial(forward_attention_layer,
                                    stride=stride, padding=padding))
    outs = jax.block_until_ready(fwd(input_features, input_masks, conv_w, mask_w))

    refs = _reference_forward(input_features, input_masks, conv_w, mask_w,
                              stride=stride, padding=padding)

    names = ("convOut", "maskUpdate", "convFeatures", "maskActiv")
    for name, got, ref in zip(names, outs, refs):
        assert got.shape == ref.shape, (name, got.shape, ref.shape)
        assert got.dtype == ref.dtype, (name, got.dtype, ref.dtype)
        # Kernel uses default MXU precision (bf16 passes) vs reference HIGHEST.
        assert jnp.allclose(got, ref, atol=5e-3, rtol=5e-3), name

    print("KERNEL_OK")
</pallas_src>

<mosaic_0001>
module attributes {stable_mosaic.version = 11 : i64} {
  func.func @_fused_attention_kernel(%arg0: i32, %arg1: i32, %arg2: memref<1x36x256xf32, #tpu.memory_space<vmem>>, %arg3: memref<1x27x256xf32, #tpu.memory_space<vmem>>, %arg4: memref<8x36xf32, #tpu.memory_space<vmem>>, %arg5: memref<8x27xf32, #tpu.memory_space<vmem>>, %arg6: memref<1x8x256xf32, #tpu.memory_space<vmem>>, %arg7: memref<1x8x256xf32, #tpu.memory_space<vmem>>, %arg8: memref<1x8x256xf32, #tpu.memory_space<vmem>>, %arg9: memref<1x8x256xf32, #tpu.memory_space<vmem>>) attributes {dimension_semantics = [#tpu.dimension_semantics<parallel>, #tpu.dimension_semantics<parallel>], iteration_bounds = array<i64: 2, 1>, scalar_prefetch = 0 : i64, scratch_operands = 0 : i64, tpu.core_type = #tpu.core_type<tc>, window_params = [{transform_indices = @transform_0, window_bounds = array<i64: 1, 36, 256>}, {transform_indices = @transform_1, window_bounds = array<i64: 1, 27, 256>}, {pipeline_mode = #tpu.pipeline_mode<synchronous>, transform_indices = @transform_2, window_bounds = array<i64: 8, 36>}, {pipeline_mode = #tpu.pipeline_mode<synchronous>, transform_indices = @transform_3, window_bounds = array<i64: 8, 27>}, {transform_indices = @transform_4, window_bounds = array<i64: 1, 8, 256>}, {transform_indices = @transform_5, window_bounds = array<i64: 1, 8, 256>}, {transform_indices = @transform_6, window_bounds = array<i64: 1, 8, 256>}, {transform_indices = @transform_7, window_bounds = array<i64: 1, 8, 256>}]} {
    %c0 = arith.constant 0 : index
    %c0_0 = arith.constant 0 : index
    %c0_1 = arith.constant 0 : index
    %0 = vector.load %arg2[%c0, %c0_0, %c0_1] : memref<1x36x256xf32, #tpu.memory_space<vmem>>, vector<1x36x256xf32>
    %1 = vector.shape_cast %0 : vector<1x36x256xf32> to vector<36x256xf32>
    %c0_2 = arith.constant 0 : index
    %c0_3 = arith.constant 0 : index
    %c0_4 = arith.constant 0 : index
    %2 = vector.load %arg3[%c0_2, %c0_3, %c0_4] : memref<1x27x256xf32, #tpu.memory_space<vmem>>, vector<1x27x256xf32>
    %3 = vector.shape_cast %2 : vector<1x27x256xf32> to vector<27x256xf32>
    %c0_5 = arith.constant 0 : index
    %c0_6 = arith.constant 0 : index
    %4 = vector.load %arg4[%c0_5, %c0_6] : memref<8x36xf32, #tpu.memory_space<vmem>>, vector<8x36xf32>
    %cst = arith.constant dense<0.000000e+00> : vector<8x256xf32>
    %5 = tpu.matmul %4, %1, %cst {dimension_numbers = #tpu.dot_dimension_numbers<[1], [0], [0], [1], [0, 0, 1, 1], [], []>} : vector<8x36xf32>, vector<36x256xf32>, vector<8x256xf32> -> vector<8x256xf32>
    %c0_7 = arith.constant 0 : index
    %c0_8 = arith.constant 0 : index
    %6 = vector.load %arg5[%c0_7, %c0_8] : memref<8x27xf32, #tpu.memory_space<vmem>>, vector<8x27xf32>
    %cst_9 = arith.constant dense<0.000000e+00> : vector<8x256xf32>
    %7 = tpu.matmul %6, %3, %cst_9 {dimension_numbers = #tpu.dot_dimension_numbers<[1], [0], [0], [1], [0, 0, 1, 1], [], []>} : vector<8x27xf32>, vector<27x256xf32>, vector<8x256xf32> -> vector<8x256xf32>
    %cst_10 = arith.constant 2.000000e+00 : f32
    %8 = vector.broadcast %cst_10 : f32 to vector<8x256xf32>
    %9 = arith.subf %7, %8 : vector<8x256xf32>
    %10 = arith.mulf %9, %9 : vector<8x256xf32>
    %cst_11 = arith.constant 2.000000e+00 : f32
    %11 = vector.broadcast %cst_11 : f32 to vector<8x256xf32>
    %12 = arith.cmpf olt, %7, %11 : vector<8x256xf32>
    %cst_12 = arith.constant 1.000000e+00 : f32
    %cst_13 = arith.constant 1.000000e+00 : f32
    %13 = vector.broadcast %cst_12 : f32 to vector<8x256xf32>
    %14 = vector.broadcast %cst_13 : f32 to vector<8x256xf32>
    %15 = arith.select %12, %13, %14 : vector<8x256xi1>, vector<8x256xf32>
    %cst_14 = arith.constant 1.100000e+00 : f32
    %cst_15 = arith.constant 1.000000e-01 : f32
    %16 = vector.broadcast %cst_14 : f32 to vector<8x256xf32>
    %17 = vector.broadcast %cst_15 : f32 to vector<8x256xf32>
    %18 = arith.select %12, %16, %17 : vector<8x256xi1>, vector<8x256xf32>
    %cst_16 = arith.constant 0.000000e+00 : f32
    %cst_17 = arith.constant 1.000000e+00 : f32
    %19 = vector.broadcast %cst_16 : f32 to vector<8x256xf32>
    %20 = vector.broadcast %cst_17 : f32 to vector<8x256xf32>
    %21 = arith.select %12, %19, %20 : vector<8x256xi1>, vector<8x256xf32>
    %cst_18 = arith.constant 0.000000e+00 : f32
    %22 = vector.broadcast %cst_18 : f32 to vector<8x256xf32>
    %23 = arith.subf %22, %15 : vector<8x256xf32>
    %24 = arith.mulf %23, %10 : vector<8x256xf32>
    %25 = math.exp %24 : vector<8x256xf32>
    %26 = arith.mulf %18, %25 : vector<8x256xf32>
    %27 = arith.addf %21, %26 : vector<8x256xf32>
    %cst_19 = arith.constant 0.000000e+00 : f32
    %28 = vector.broadcast %cst_19 : f32 to vector<8x256xf32>
    %29 = arith.maximumf %7, %28 : vector<8x256xf32>
    %cst_20 = arith.constant 0.000000e+00 : f32
    %30 = vector.broadcast %cst_20 : f32 to vector<8x256xf32>
    %31 = arith.cmpf ogt, %29, %30 : vector<8x256xf32>
    %cst_21 = arith.constant 1.000000e-30 : f32
    %32 = vector.broadcast %cst_21 : f32 to vector<8x256xf32>
    %33 = arith.maximumf %29, %32 : vector<8x256xf32>
    %34 = math.log %33 : vector<8x256xf32>
    %cst_22 = arith.constant 8.000000e-01 : f32
    %35 = vector.broadcast %cst_22 : f32 to vector<8x256xf32>
    %36 = arith.mulf %35, %34 : vector<8x256xf32>
    %37 = math.exp %36 : vector<8x256xf32>
    %cst_23 = arith.constant 0.000000e+00 : f32
    %38 = vector.broadcast %cst_23 : f32 to vector<8x256xf32>
    %39 = arith.select %31, %37, %38 : vector<8x256xi1>, vector<8x256xf32>
    %c0_24 = arith.constant 0 : index
    %c0_25 = arith.constant 0 : index
    %c0_26 = arith.constant 0 : index
    %40 = vector.load %arg8[%c0_24, %c0_25, %c0_26] : memref<1x8x256xf32, #tpu.memory_space<vmem>>, vector<1x8x256xf32>
    %41 = vector.shape_cast %40 : vector<1x8x256xf32> to vector<8x256xf32>
    %42 = vector.shape_cast %5 : vector<8x256xf32> to vector<1x8x256xf32>
    tpu.vector_store %arg8[%c0_24, %c0_25, %c0_26], %42 {strides = array<i32>} : memref<1x8x256xf32, #tpu.memory_space<vmem>>, vector<1x8x256xf32>,
    %c0_27 = arith.constant 0 : index
    %c0_28 = arith.constant 0 : index
    %c0_29 = arith.constant 0 : index
    %43 = vector.load %arg9[%c0_27, %c0_28, %c0_29] : memref<1x8x256xf32, #tpu.memory_space<vmem>>, vector<1x8x256xf32>
    %44 = vector.shape_cast %43 : vector<1x8x256xf32> to vector<8x256xf32>
    %45 = vector.shape_cast %27 : vector<8x256xf32> to vector<1x8x256xf32>
    tpu.vector_store %arg9[%c0_27, %c0_28, %c0_29], %45 {strides = array<i32>} : memref<1x8x256xf32, #tpu.memory_space<vmem>>, vector<1x8x256xf32>,
    %46 = arith.mulf %5, %27 : vector<8x256xf32>
    %c0_30 = arith.constant 0 : index
    %c0_31 = arith.constant 0 : index
    %c0_32 = arith.constant 0 : index
    %47 = vector.load %arg6[%c0_30, %c0_31, %c0_32] : memref<1x8x256xf32, #tpu.memory_space<vmem>>, vector<1x8x256xf32>
    %48 = vector.shape_cast %47 : vector<1x8x256xf32> to vector<8x256xf32>
    %49 = vector.shape_cast %46 : vector<8x256xf32> to vector<1x8x256xf32>
    tpu.vector_store %arg6[%c0_30, %c0_31, %c0_32], %49 {strides = array<i32>} : memref<1x8x256xf32, #tpu.memory_space<vmem>>, vector<1x8x256xf32>,
    %c0_33 = arith.constant 0 : index
    %c0_34 = arith.constant 0 : index
    %c0_35 = arith.constant 0 : index
    %50 = vector.load %arg7[%c0_33, %c0_34, %c0_35] : memref<1x8x256xf32, #tpu.memory_space<vmem>>, vector<1x8x256xf32>
    %51 = vector.shape_cast %50 : vector<1x8x256xf32> to vector<8x256xf32>
    %52 = vector.shape_cast %39 : vector<8x256xf32> to vector<1x8x256xf32>
    tpu.vector_store %arg7[%c0_33, %c0_34, %c0_35], %52 {strides = array<i32>} : memref<1x8x256xf32, #tpu.memory_space<vmem>>, vector<1x8x256xf32>,
    return
  }
  func.func @transform_0(%arg0: i32, %arg1: i32) -> (i32, i32, i32) {
    %c0_i32 = arith.constant 0 : i32
    %c0_i32_0 = arith.constant 0 : i32
    return %arg0, %c0_i32, %arg1 : i32, i32, i32
  }
  func.func @transform_1(%arg0: i32, %arg1: i32) -> (i32, i32, i32) {
    %c0_i32 = arith.constant 0 : i32
    %c0_i32_0 = arith.constant 0 : i32
    return %arg0, %c0_i32, %arg1 : i32, i32, i32
  }
  func.func @transform_2(%arg0: i32, %arg1: i32) -> (i32, i32) {
    %c0_i32 = arith.constant 0 : i32
    %c0_i32_0 = arith.constant 0 : i32
    %c0_i32_1 = arith.constant 0 : i32
    return %c0_i32, %c0_i32_0 : i32, i32
  }
  func.func @transform_3(%arg0: i32, %arg1: i32) -> (i32, i32) {
    %c0_i32 = arith.constant 0 : i32
    %c0_i32_0 = arith.constant 0 : i32
    %c0_i32_1 = arith.constant 0 : i32
    return %c0_i32, %c0_i32_0 : i32, i32
  }
  func.func @transform_4(%arg0: i32, %arg1: i32) -> (i32, i32, i32) {
    %c0_i32 = arith.constant 0 : i32
    %c0_i32_0 = arith.constant 0 : i32
    return %arg0, %c0_i32, %arg1 : i32, i32, i32
  }
  func.func @transform_5(%arg0: i32, %arg1: i32) -> (i32, i32, i32) {
    %c0_i32 = arith.constant 0 : i32
    %c0_i32_0 = arith.constant 0 : i32
    return %arg0, %c0_i32, %arg1 : i32, i32, i32
  }
  func.func @transform_6(%arg0: i32, %arg1: i32) -> (i32, i32, i32) {
    %c0_i32 = arith.constant 0 : i32
    %c0_i32_0 = arith.constant 0 : i32
    return %arg0, %c0_i32, %arg1 : i32, i32, i32
  }
  func.func @transform_7(%arg0: i32, %arg1: i32) -> (i32, i32, i32) {
    %c0_i32 = arith.constant 0 : i32
    %c0_i32_0 = arith.constant 0 : i32
    return %arg0, %c0_i32, %arg1 : i32, i32, i32
  }
}

</mosaic_0001>

<bundles_post_ra>
// kernel: forward_attention_layer.1
= control target key start
LH: loop header
LB: loop body
LE: loop exit
PB: predicated region body
PF: predicated region fallthrough
CT: control target
= control target key end

     0   :  { %s1049_s24 = smov 0   ;;  %s1051_s25 = smov 0   ;;  %s1125_s0 = inlined_call_operand.vmem [shape: f32[2,36,256], index: 0, kind: input, shape index: {}]   ;;  %s1126_s1 = inlined_call_operand.vmem [shape: f32[2,27,256], index: 1, kind: input, shape index: {}]   ;;  %s1127_s2 = inlined_call_operand.vmem [shape: f32[8,36], index: 2, kind: input, shape index: {}]   ;;  %s1128_s3 = inlined_call_operand.vmem [shape: f32[8,27], index: 3, kind: input, shape index: {}]   ;;  %s1129_s4 = inlined_call_operand.vmem [shape: f32[2,8,256], index: 4, kind: output, shape index: {0}]   ;;  %s1130_s5 = inlined_call_operand.vmem [shape: f32[2,8,256], index: 5, kind: output, shape index: {1}]   ;;  %s1131_s6 = inlined_call_operand.vmem [shape: f32[2,8,256], index: 6, kind: output, shape index: {2}]   ;;  %s1132_s7 = inlined_call_operand.vmem [shape: f32[2,8,256], index: 7, kind: output, shape index: {3}]  }
   0x1   :  { %s1053_s26 = smov 0  }
   0x2 LB: > { %s30_s27 = sadd.s32 1, %s1000_s25  ;;  %p915_p0 = scmp.ge.s32.totalorder %s1004_s26, 1  ;;  %s1004_s26 = sphi %s1053_s26, %s18_s26   ;;  %s1000_s25 = sphi %s1051_s25, %s1134_s25   ;;  %s996_s24 = sphi %s1049_s24, %s1133_s24  }
   0x3   : > { %p32_p1 = scmp.ge.s32.totalorder %s30_s27, 2  ;;  %p288_p2 = scmp.lt.s32.totalorder %s1004_s26, 3 }
   0x5   : > { %s1136_s27 = smov (%p32_p1, %s30_s27), 0  ;;  %p289_p3 = pnand %p915_p0, %p288_p2 }
   0x6   : > { %p365_p4 = scmp.lt.s32.totalorder (!%p289_p3), %s996_s24, 1 }
   0x7   : > { %292 = sbr.rel (%p289_p3) target bundleno = 259 (0x103), region = 36 }
   0xc   : > { %v1006_v0 = vmov 0.0   ;;  %s1138_s24 = smov (!%p365_p4, %s996_s24), 1  ;;  %vm530_vm0 = vcmask 1042432   ;;  %vm447_vm1 = vcmask 1043456   ;;  %v525_v15 = vld [vmem:[%s1128_s3] sm:$0xff]  ;;  %vm526_vm2 = vcmask 220160  }
   0xd   : > { %601 = vmatprep.mubr.f32.mxu1 %v1006_v0  ;;  %518 = vmatprep.mubr.f32.mxu0 %v1006_v0  ;;  %s942_s28 = smul.u32 80, %s1138_s24  ;;  %s937_s29 = sshll.u32 %s1138_s24, 6  ;;  %v442_v20 = vld [vmem:[%s1127_s2] sm:$0xff]  ;;  %vm443_vm3 = vcmask 293888   ;;  %v1007_v42 = vmov 0.1  }
   0xe   : > { %s382_s9 = scalar_lea.vmem %s1126_s1, %s937_s29  ;;  %s1096_s17 = sshll.u32 %s1138_s24, 4  ;;  %v1008_v50 = vmov 1.0  }
   0xf   : > { %v441_v1 = vld [vmem:[%s382_s9 + $0x38] sm:$0x7]  ;;  %v440_v2 = vld [vmem:[%s382_s9 + $0x30] sm:$0x7]  ;;  %v439_v3 = vld [vmem:[%s382_s9 + $0x28] sm:$0xff]  ;;  %s1077_s12 = scalar_lea.vmem %s1125_s0, %s942_s28  ;;  %s412_s20 = scalar_lea.vmem %s1131_s6, %s1096_s17 }
  0x10   : > { %930 = vmatprep.subr.msk.mxu1 %vm530_vm0, %v441_v1  ;;  %v438_v4 = vld [vmem:[%s382_s9 + $0x20] sm:$0xff]  ;;  %v437_v5 = vld [vmem:[%s382_s9 + $0x18] sm:$0xff]  ;;  %v436_v6 = vld [vmem:[%s382_s9 + $0x10] sm:$0xff]  ;;  %s422_s23 = scalar_lea.vmem %s1132_s7, %s1096_s17  ;;  %s392_s29 = scalar_lea.vmem %s1129_s4, %s1096_s17 }
  0x11   : > { %931 = vmatpush1.msk.msra.mxu1 %vm530_vm0, %v440_v2  ;;  %v433_v7 = vld [vmem:[%s1077_s12 + $0x48] sm:$0xf]  ;;  %v432_v8 = vld [vmem:[%s1077_s12 + $0x40] sm:$0xf]  ;;  %v431_v9 = vld [vmem:[%s1077_s12 + $0x38] sm:$0xff] }
  0x12   : > { %563 = vmatprep.subr.mxu1 %v439_v3  ;;  %927 = vmatprep.subr.msk.mxu0 %vm447_vm1, %v433_v7  ;;  %v430_v10 = vld [vmem:[%s1077_s12 + $0x30] sm:$0xff]  ;;  %v435_v11 = vld [vmem:[%s382_s9 + $0x8] sm:$0xff]  ;;  %v434_v13 = vld [vmem:[%s382_s9] sm:$0xff]  ;;  %s402_s9 = scalar_lea.vmem %s1130_s5, %s1096_s17 }
  0x13   : > { %564 = vmatpush1.msra.mxu1 %v438_v4  ;;  %928 = vmatpush1.msk.msra.mxu0 %vm447_vm1, %v432_v8  ;;  %v429_v12 = vld [vmem:[%s1077_s12 + $0x28] sm:$0xff]  ;;  %v428_v14 = vld [vmem:[%s1077_s12 + $0x20] sm:$0xff]  ;;  %v427_v16 = vld [vmem:[%s1077_s12 + $0x18] sm:$0xff] }
  0x14   : > { %565 = vmatprep.subr.mxu1 %v437_v5  ;;  %478 = vmatprep.subr.mxu0 %v431_v9  ;;  %v426_v17 = vld [vmem:[%s1077_s12 + $0x10] sm:$0xff]  ;;  %v425_v18 = vld [vmem:[%s1077_s12 + $0x8] sm:$0xff]  ;;  %v424_v19 = vld [vmem:[%s1077_s12] sm:$0xff] }
  0x15   : > { %566 = vmatpush1.msra.mxu1 %v436_v6  ;;  %479 = vmatpush1.msra.mxu0 %v430_v10 }
  0x16   : > { %567 = vmatprep.subr.mxu1 %v435_v11  ;;  %480 = vmatprep.subr.mxu0 %v429_v12 }
  0x17   : > { %568 = vmatpush1.msra.mxu1 %v434_v13  ;;  %481 = vmatpush1.msra.mxu0 %v428_v14 }
  0x18   : > { %932 = vmatmul.mubr.msk.f32.vlgmr.msra.gmra.mxu1 %vm526_vm2, %v525_v15  ;;  %482 = vmatprep.subr.mxu0 %v427_v16 }
  0x19   : > { %483 = vmatpush1.msra.mxu0 %v426_v17 }
  0x1a   : > { %484 = vmatprep.subr.mxu0 %v425_v18 }
  0x1b   : > { %485 = vmatpush1.msra.mxu0 %v424_v19 }
  0x1c   : > { %929 = vmatmul.mubr.msk.f32.vlgmr.msra.gmra.mxu0 %vm443_vm3, %v442_v20 }
  0xd8   : > { %v603_v21 = vpop.f32.mrf.mxu1 }
  0xd9   : > { %v933_v22 = vadd.f32 -2.0, %v603_v21  ;;  %v628_v23 = vmax.f32 %v603_v21, 0.0  ;;  %vm612_vm4 = vcmp.lt.f32.partialorder %v603_v21, 2.0 }
  0xda   : > { %v605_v24 = vpop.f32.mrf.mxu1  ;;  %v614_v43 = vsel %vm612_vm4, 1.1, %v1007_v42  ;;  %v616_v51 = vsel %vm612_vm4, 0.0, %v1008_v50 }
  0xdb   : > { %v610_v25 = vmul.f32 %v933_v22, %v933_v22  ;;  %v632_v26 = vmax.f32 %v628_v23, 1e-30  ;;  %v934_v27 = vadd.f32 -2.0, %v605_v24  ;;  %v629_v28 = vmax.f32 %v605_v24, 0.0 }
  0xdc   : > { %v520_v29 = vpop.f32.mrf.mxu0  ;;  %vm613_vm5 = vcmp.lt.f32.partialorder %v605_v24, 2.0  ;;  %vm630_vm6 = vcmp.gt.f32.partialorder %v628_v23, 0.0 }
  0xdd   : > { %v618_v30 = vmul.f32 -1.0, %v610_v25  ;;  %970 = vlog2.f32 %v632_v26  ;;  %v611_v31 = vmul.f32 %v934_v27, %v934_v27  ;;  %646 = vst [vmem:[%s412_s20] sm:$0xff] %v520_v29  ;;  %v633_v32 = vmax.f32 %v629_v28, 1e-30 }
  0xde   : > { %v522_v33 = vpop.f32.mrf.mxu0  ;;  %v615_v48 = vsel %vm613_vm5, 1.1, %v1007_v42  ;;  %v617_v54 = vsel %vm613_vm5, 0.0, %v1008_v50  ;;  %vm631_vm7 = vcmp.gt.f32.partialorder %v629_v28, 0.0 }
  0xdf   : > { %v620_v34 = vmul.f32 1.442695, %v618_v30  ;;  %v619_v35 = vmul.f32 -1.0, %v611_v31  ;;  %647 = vst [vmem:[%s412_s20 + $0x8] sm:$0xff] %v522_v33  ;;  %972 = vlog2.f32 %v633_v32 }
  0xe1   : > { %974 = vpow2.f32 %v620_v34  ;;  %v622_v36 = vmul.f32 1.442695, %v619_v35 }
  0xe3   : > { %976 = vpow2.f32 %v622_v36 }
  0xea   : > { %v971_v37 = vpop.eup %970 }
  0xeb   : > { %v635_v38 = vmul.f32 0.6931472, %v971_v37 }
  0xec   : > { %v973_v39 = vpop.eup %972 }
  0xed   : > { %v638_v40 = vmul.f32 0.8, %v635_v38  ;;  %v637_v44 = vmul.f32 0.6931472, %v973_v39 }
  0xee   : > { %v975_v41 = vpop.eup %974 }
  0xef   : > { %v640_v45 = vmul.f32 1.442695, %v638_v40  ;;  %v624_v46 = vmul.f32 %v975_v41, %v614_v43  ;;  %v639_v49 = vmul.f32 0.8, %v637_v44 }
  0xf0   : > { %v977_v47 = vpop.eup %976 }
  0xf1   : > { %978 = vpow2.f32 %v640_v45  ;;  %v625_v52 = vmul.f32 %v977_v47, %v615_v48  ;;  %v626_v53 = vadd.f32 %v624_v46, %v616_v51  ;;  %v642_v55 = vmul.f32 1.442695, %v639_v49 }
  0xf3   : > { %v650_v56 = vmul.f32 %v626_v53, %v520_v29  ;;  %v627_v57 = vadd.f32 %v625_v52, %v617_v54  ;;  %648 = vst [vmem:[%s422_s23] sm:$0xff] %v626_v53  ;;  %980 = vpow2.f32 %v642_v55 }
  0xf5   : > { %649 = vst [vmem:[%s422_s23 + $0x8] sm:$0xff] %v627_v57  ;;  %v651_v58 = vmul.f32 %v627_v57, %v522_v33  ;;  %652 = vst [vmem:[%s392_s29] sm:$0xff] %v650_v56 }
  0xf7   : > { %653 = vst [vmem:[%s392_s29 + $0x8] sm:$0xff] %v651_v58 }
  0xfe   : > { %v979_v59 = vpop.eup %978 }
  0xff   : > { %v644_v60 = vsel %vm630_vm6, %v979_v59, 0.0 }
 0x100   : > { %654 = vst [vmem:[%s402_s9] sm:$0xff] %v644_v60  ;;  %v981_v61 = vpop.eup %980 }
 0x101   : > { %v645_v62 = vsel %vm631_vm7, %v981_v61, 0.0 }
 0x102   : > { %655 = vst [vmem:[%s402_s9 + $0x8] sm:$0xff] %v645_v62 }
 0x103 PF: > { %s18_s26 = sadd.s32 1, %s1004_s26   ;;  %s1133_s24 = smov %s1000_s25 }
 0x104   : > { %p15_p5 = scmp.ge.s32.totalorder %s18_s26, 4   ;;  %s1134_s25 = smov %s1136_s27 }
 0x106   :  { %17 = sbr.rel (!%p15_p5) target bundleno = 2 (0x2), region = 105 }

</bundles_post_ra>
